<compile_context>
chip_gen: v7x
topology: tpu7x:2x2x1
jax: 0.10.0
libtpu: 0.0.40
codegen_flags: <defaults>
</compile_context>

<pallas_src>
import functools
import math

import jax
import jax.numpy as jnp
from jax.experimental import pallas as pl
from jax.experimental.pallas import tpu as pltpu


def _round_up(x: int, m: int) -> int:
    return (x + m - 1) // m * m


def _cdiv(a: int, b: int) -> int:
    return -(-a // b)


# ----------------------------------------------------------------------------
# Pallas kernel: elementwise neox rotation on one tile of T rows.
# ----------------------------------------------------------------------------
def _phi3_longrope_kernel(cs_ref, q_ref, k_ref, q_out_ref, k_out_ref, *,
                          head_size: int):
    D = head_size
    half = D // 2

    # cs: [tT, 2*D] f32, lane-dense, layout [cos|cos | -sin|sin] (sign folded
    # in the wrapper).  Slices land exactly on 128-lane boundaries for D=128.
    cs = cs_ref[...]
    cos = cs[:, :D][:, None, :]           # [tT, 1, D]
    sin_signed = cs[:, D:][:, None, :]    # [tT, 1, D]

    def _apply(x_ref, o_ref):
        x = x_ref[...].astype(jnp.float32)            # [tT, H, D]
        # rotate_neox(x) == roll(x, half, lane axis) * sign; sign is already in
        # sin_signed, and roll runs on the XLU (free slot for a mem-bound op).
        rot = pltpu.roll(x, shift=half, axis=2)
        o_ref[...] = (x * cos + rot * sin_signed).astype(o_ref.dtype)

    _apply(q_ref, q_out_ref)
    _apply(k_ref, k_out_ref)


# ----------------------------------------------------------------------------
# Tiling / VMEM policy (generation- and dtype-aware)
# ----------------------------------------------------------------------------
def _vmem_capacity_bytes() -> int:
    try:
        info = pltpu.get_tpu_info()
        cap = getattr(info, "vmem_capacity_bytes", None)
        if cap:
            return int(cap)
    except Exception:
        pass
    return 64 * 1024 * 1024  # conservative: v7x per-TensorCore VMEM


def _pick_tiling(T, num_q, num_k, D, q_itemsize, k_itemsize, tile_t_cap=None):
    vmem_phys = _vmem_capacity_bytes()
    # Per-row VMEM bytes with double-buffered inputs AND outputs for q/k plus
    # the double-buffered f32 [cos|cos|-sin|sin] slab.
    per_row = 4 * (num_q * q_itemsize + num_k * k_itemsize) * D + 2 * (2 * D) * 4
    budget = int(vmem_phys * 0.70)        # headroom for compiler/internal scratch
    tT_fit = max(8, (budget // per_row) // 8 * 8)
    # Target >= ~8 grid steps when T is large enough (megacore split on v7x,
    # pipeline depth on all chips); collapses gracefully for small T.
    tT_split = max(8, _round_up(_cdiv(T, 8), 8))
    tT = min(tT_fit, tT_split, 2048)
    if tile_t_cap is not None:
        tT = min(tT, max(8, _round_up(int(tile_t_cap), 8)))
    need = per_row * tT
    vmem_limit = int(min(vmem_phys * 0.85,
                         max(32 * 1024 * 1024, need + (4 << 20))))
    return tT, vmem_limit


# ----------------------------------------------------------------------------
# Wrapper: offset selection + row gather in XLA, tiled pallas_call for the math
# ----------------------------------------------------------------------------
@functools.partial(jax.jit, static_argnames=("head_size", "orig_max_pos",
                                             "tile_t", "vmem_limit"))
def _phi3_longrope_jit(positions, query, key, cache, offsets, *, head_size,
                       orig_max_pos, tile_t, vmem_limit):
    T = positions.shape[0]
    D = head_size
    half = D // 2
    num_q = query.shape[-1] // D
    num_k = key.shape[-1] // D

    # --- plain-JAX glue: long/short switch + tiny row gather of cos/sin ------
    pos = positions.astype(jnp.int32)
    long_off = jnp.where(jnp.any(pos > orig_max_pos), orig_max_pos, 0).astype(jnp.int32)
    idx = pos + long_off
    if offsets is not None:
        idx = idx + offsets.astype(jnp.int32)
    cs_rows = cache[idx].astype(jnp.float32)          # [T, D] = [cos(half)|sin(half)]
    cos_half = cs_rows[:, :half]
    sin_half = cs_rows[:, half:]
    # Lane-dense slab [cos|cos|-sin|sin]; rotation sign folded here for free.
    cs_packed = jnp.concatenate([cos_half, cos_half, -sin_half, sin_half], axis=-1)

    q3 = query.reshape(T, num_q, D)
    k3 = key.reshape(T, num_k, D)

    tT = tile_t
    grid = (_cdiv(T, tT),)   # ragged last block handled by Pallas (no padding)
    kernel = functools.partial(_phi3_longrope_kernel, head_size=D)

    # NOTE: no input_output_aliases — query/key are not donated here; aliasing
    # without donation would force XLA to insert defensive full copies.
    # TODO(synk): if head_size is not a multiple of 128 (e.g. Phi-3-mini D=96),
    # stores become masked partials; a lane-dense repack would be needed.
    q_out, k_out = pl.pallas_call(
        kernel,
        grid=grid,
        in_specs=[
            pl.BlockSpec((tT, 2 * D), lambda i: (i, 0)),
            pl.BlockSpec((tT, num_q, D), lambda i: (i, 0, 0)),
            pl.BlockSpec((tT, num_k, D), lambda i: (i, 0, 0)),
        ],
        out_specs=(
            pl.BlockSpec((tT, num_q, D), lambda i: (i, 0, 0)),
            pl.BlockSpec((tT, num_k, D), lambda i: (i, 0, 0)),
        ),
        out_shape=(
            jax.ShapeDtypeStruct((T, num_q, D), query.dtype),
            jax.ShapeDtypeStruct((T, num_k, D), key.dtype),
        ),
        compiler_params=pltpu.CompilerParams(
            dimension_semantics=("parallel",),
            vmem_limit_bytes=vmem_limit,
        ),
    )(cs_packed, q3, k3)

    return q_out.reshape(T, num_q * D), k_out.reshape(T, num_k * D)


def phi3_longrope_apply(positions, query, key, cache, *, head_size,
                        orig_max_pos, offsets=None, tile_t=None):
    """positions: [T] int; query: [T, Hq*D]; key: [T, Hk*D];
    cache: [orig_max_pos + max_pos, D] rows=[short;long], cols=[cos|sin]."""
    T = positions.shape[0]
    D = head_size
    num_q = query.shape[-1] // D
    num_k = key.shape[-1] // D
    tT, vmem_limit = _pick_tiling(
        T, num_q, num_k, D,
        jnp.dtype(query.dtype).itemsize, jnp.dtype(key.dtype).itemsize,
        tile_t_cap=tile_t)
    return _phi3_longrope_jit(positions, query, key, cache, offsets,
                              head_size=head_size, orig_max_pos=orig_max_pos,
                              tile_t=tT, vmem_limit=vmem_limit)


# ----------------------------------------------------------------------------
# Parameter / cache construction (mirrors the nn.Module __init__)
# ----------------------------------------------------------------------------
def _compute_cos_sin_cache(max_pos, rescale_factors, mscale, scaling_factor,
                           head_size, base):
    rf = jnp.asarray(rescale_factors, dtype=jnp.float32)
    inv_freq = 1.0 / (rf * (base ** (jnp.arange(0, head_size, 2,
                                                dtype=jnp.float32) / head_size)))
    t = jnp.arange(max_pos, dtype=jnp.float32)
    freqs = jnp.einsum('i,j->ij', t, inv_freq)
    cos = jnp.cos(freqs) * mscale * scaling_factor
    sin = jnp.sin(freqs) * mscale * scaling_factor
    return jnp.concatenate([cos, sin], axis=-1)


def build_long_short_cache(head_size, max_pos, orig_max_pos, base,
                           short_factor, long_factor, short_mscale, long_mscale,
                           dtype=jnp.float32):
    scale = max_pos / orig_max_pos
    if scale <= 1.0:
        scaling_factor = 1.0
    else:
        scaling_factor = math.sqrt(1 + math.log(scale) / math.log(orig_max_pos))
    short_cache = _compute_cos_sin_cache(orig_max_pos, short_factor, short_mscale,
                                         scaling_factor, head_size, base).astype(dtype)
    long_cache = _compute_cos_sin_cache(max_pos, long_factor, long_mscale,
                                        scaling_factor, head_size, base).astype(dtype)
    return jnp.concatenate([short_cache, long_cache], axis=0)


# ----------------------------------------------------------------------------
# Pure-JAX reference for verification
# ----------------------------------------------------------------------------
def reference(positions, query, key, cache, *, head_size, orig_max_pos):
    T = positions.shape[0]
    q = query.reshape(T, -1, head_size)
    k = key.reshape(T, -1, head_size)
    half = head_size // 2
    off = jnp.where(jnp.any(positions > orig_max_pos), orig_max_pos, 0)
    idx = positions + off
    cs = cache[idx]
    cos = jnp.tile(cs[:, :half], (1, 2))[:, None, :]
    sin = jnp.tile(cs[:, half:], (1, 2))[:, None, :]

    def rot(x):
        return jnp.concatenate([-x[..., half:], x[..., :half]], axis=-1)

    q = q * cos + rot(q) * sin
    k = k * cos + rot(k) * sin
    return q.reshape(T, -1), k.reshape(T, -1)


# ----------------------------------------------------------------------------
if __name__ == "__main__":
    head_size = 128
    max_pos = 64
    orig_max_pos = 32
    base = 10000
    num_q_heads = 4
    num_kv_heads = 2
    T = 12   # not a multiple of the 8-row tile -> exercises the ragged last block

    half = head_size // 2
    short_factor = [1.0 + 0.01 * i for i in range(half)]
    long_factor = [1.0 + 0.05 * i for i in range(half)]
    short_mscale = 1.0
    long_mscale = 1.1

    cache = build_long_short_cache(head_size, max_pos, orig_max_pos, base,
                                   short_factor, long_factor,
                                   short_mscale, long_mscale,
                                   dtype=jnp.float32)        # [96, 128]

    key0 = jax.random.PRNGKey(0)
    k_pos, k_q, k_k = jax.random.split(key0, 3)
    positions = jax.random.randint(k_pos, (T,), 0, max_pos, dtype=jnp.int32)
    query = jax.random.normal(k_q, (T, num_q_heads * head_size), dtype=jnp.float32)
    key_ = jax.random.normal(k_k, (T, num_kv_heads * head_size), dtype=jnp.float32)

    q_out, k_out = phi3_longrope_apply(positions, query, key_, cache,
                                       head_size=head_size,
                                       orig_max_pos=orig_max_pos)
    jax.block_until_ready((q_out, k_out))

    q_ref, k_ref = reference(positions, query, key_, cache,
                             head_size=head_size, orig_max_pos=orig_max_pos)

    assert q_out.shape == query.shape and k_out.shape == key_.shape
    assert jnp.allclose(q_out, q_ref, atol=1e-5, rtol=1e-5)
    assert jnp.allclose(k_out, k_ref, atol=1e-5, rtol=1e-5)

    print("KERNEL_OK")
</pallas_src>

<mosaic_0001>
module attributes {stable_mosaic.version = 11 : i64} {
  func.func @_phi3_longrope_kernel(%arg0: i32, %arg1: memref<8x256xf32, #tpu.memory_space<vmem>>, %arg2: memref<8x4x128xf32, #tpu.memory_space<vmem>>, %arg3: memref<8x2x128xf32, #tpu.memory_space<vmem>>, %arg4: memref<8x4x128xf32, #tpu.memory_space<vmem>>, %arg5: memref<8x2x128xf32, #tpu.memory_space<vmem>>) attributes {dimension_semantics = [#tpu.dimension_semantics<parallel>], iteration_bounds = array<i64: 2>, scalar_prefetch = 0 : i64, scratch_operands = 0 : i64, tpu.core_type = #tpu.core_type<tc>, window_params = [{transform_indices = @transform_0, window_bounds = array<i64: 8, 256>}, {transform_indices = @transform_1, window_bounds = array<i64: 8, 4, 128>}, {transform_indices = @transform_2, window_bounds = array<i64: 8, 2, 128>}, {transform_indices = @transform_3, window_bounds = array<i64: 8, 4, 128>}, {transform_indices = @transform_4, window_bounds = array<i64: 8, 2, 128>}]} {
    %c0 = arith.constant 0 : index
    %c0_0 = arith.constant 0 : index
    %0 = vector.load %arg1[%c0, %c0_0] : memref<8x256xf32, #tpu.memory_space<vmem>>, vector<8x256xf32>
    %1 = vector.extract_strided_slice %0 {offsets = [0, 0], sizes = [8, 128], strides = [1, 1]} : vector<8x256xf32> to vector<8x128xf32>
    %2 = vector.shape_cast %1 : vector<8x128xf32> to vector<8x1x128xf32>
    %3 = vector.extract_strided_slice %0 {offsets = [0, 128], sizes = [8, 128], strides = [1, 1]} : vector<8x256xf32> to vector<8x128xf32>
    %4 = vector.shape_cast %3 : vector<8x128xf32> to vector<8x1x128xf32>
    %c0_1 = arith.constant 0 : index
    %c0_2 = arith.constant 0 : index
    %c0_3 = arith.constant 0 : index
    %5 = vector.load %arg2[%c0_1, %c0_2, %c0_3] : memref<8x4x128xf32, #tpu.memory_space<vmem>>, vector<8x4x128xf32>
    %c64_i32 = arith.constant 64 : i32
    %6 = tpu.dynamic_rotate %5 by %c64_i32 dim 2 : vector<8x4x128xf32>, i32 -> vector<8x4x128xf32>
    %7 = vector.broadcast %2 : vector<8x1x128xf32> to vector<8x4x128xf32>
    %8 = arith.mulf %5, %7 : vector<8x4x128xf32>
    %9 = vector.broadcast %4 : vector<8x1x128xf32> to vector<8x4x128xf32>
    %10 = arith.mulf %6, %9 : vector<8x4x128xf32>
    %11 = arith.addf %8, %10 : vector<8x4x128xf32>
    %c0_4 = arith.constant 0 : index
    %c0_5 = arith.constant 0 : index
    %c0_6 = arith.constant 0 : index
    %12 = vector.load %arg4[%c0_4, %c0_5, %c0_6] : memref<8x4x128xf32, #tpu.memory_space<vmem>>, vector<8x4x128xf32>
    tpu.vector_store %arg4[%c0_4, %c0_5, %c0_6], %11 {strides = array<i32>} : memref<8x4x128xf32, #tpu.memory_space<vmem>>, vector<8x4x128xf32>,
    %c0_7 = arith.constant 0 : index
    %c0_8 = arith.constant 0 : index
    %c0_9 = arith.constant 0 : index
    %13 = vector.load %arg3[%c0_7, %c0_8, %c0_9] : memref<8x2x128xf32, #tpu.memory_space<vmem>>, vector<8x2x128xf32>
    %c64_i32_10 = arith.constant 64 : i32
    %14 = tpu.dynamic_rotate %13 by %c64_i32_10 dim 2 : vector<8x2x128xf32>, i32 -> vector<8x2x128xf32>
    %15 = vector.broadcast %2 : vector<8x1x128xf32> to vector<8x2x128xf32>
    %16 = arith.mulf %13, %15 : vector<8x2x128xf32>
    %17 = vector.broadcast %4 : vector<8x1x128xf32> to vector<8x2x128xf32>
    %18 = arith.mulf %14, %17 : vector<8x2x128xf32>
    %19 = arith.addf %16, %18 : vector<8x2x128xf32>
    %c0_11 = arith.constant 0 : index
    %c0_12 = arith.constant 0 : index
    %c0_13 = arith.constant 0 : index
    %20 = vector.load %arg5[%c0_11, %c0_12, %c0_13] : memref<8x2x128xf32, #tpu.memory_space<vmem>>, vector<8x2x128xf32>
    tpu.vector_store %arg5[%c0_11, %c0_12, %c0_13], %19 {strides = array<i32>} : memref<8x2x128xf32, #tpu.memory_space<vmem>>, vector<8x2x128xf32>,
    return
  }
  func.func @transform_0(%arg0: i32) -> (i32, i32) {
    %c0_i32 = arith.constant 0 : i32
    %c0_i32_0 = arith.constant 0 : i32
    return %arg0, %c0_i32 : i32, i32
  }
  func.func @transform_1(%arg0: i32) -> (i32, i32, i32) {
    %c0_i32 = arith.constant 0 : i32
    %c0_i32_0 = arith.constant 0 : i32
    %c0_i32_1 = arith.constant 0 : i32
    return %arg0, %c0_i32, %c0_i32_0 : i32, i32, i32
  }
  func.func @transform_2(%arg0: i32) -> (i32, i32, i32) {
    %c0_i32 = arith.constant 0 : i32
    %c0_i32_0 = arith.constant 0 : i32
    %c0_i32_1 = arith.constant 0 : i32
    return %arg0, %c0_i32, %c0_i32_0 : i32, i32, i32
  }
  func.func @transform_3(%arg0: i32) -> (i32, i32, i32) {
    %c0_i32 = arith.constant 0 : i32
    %c0_i32_0 = arith.constant 0 : i32
    %c0_i32_1 = arith.constant 0 : i32
    return %arg0, %c0_i32, %c0_i32_0 : i32, i32, i32
  }
  func.func @transform_4(%arg0: i32) -> (i32, i32, i32) {
    %c0_i32 = arith.constant 0 : i32
    %c0_i32_0 = arith.constant 0 : i32
    %c0_i32_1 = arith.constant 0 : i32
    return %arg0, %c0_i32, %c0_i32_0 : i32, i32, i32
  }
}

</mosaic_0001>

<bundles_post_ra>
// kernel: _phi3_longrope_jit.1
= control target key start
LH: loop header
LB: loop body
LE: loop exit
PB: predicated region body
PF: predicated region fallthrough
CT: control target
= control target key end

     0   :  { %s1458_s15 = smov 0   ;;  %s1460_s16 = smov 0   ;;  %s1756_s0 = inlined_call_operand.vmem [shape: f32[12,256], index: 0, kind: input, shape index: {}]   ;;  %s1757_s1 = inlined_call_operand.vmem [shape: f32[12,4,128], index: 1, kind: input, shape index: {}]   ;;  %s1758_s2 = inlined_call_operand.vmem [shape: f32[12,2,128], index: 2, kind: input, shape index: {}]   ;;  %s1759_s3 = inlined_call_operand.vmem [shape: f32[12,4,128], index: 3, kind: output, shape index: {0}]   ;;  %s1760_s4 = inlined_call_operand.vmem [shape: f32[12,2,128], index: 4, kind: output, shape index: {1}]  }
   0x1   :  { %s1462_s17 = smov 0  }
   0x2 LB: > { %s1471_s18 = sadd.s32 4294967295, %s1365_s17   ;;  %s1473_s19 = sadd.s32 1, %s1365_s17   ;;  %s1365_s17 = sphi %s1462_s17, %s1770_s17   ;;  %s1361_s16 = sphi %s1460_s16, %s1769_s16   ;;  %s1357_s15 = sphi %s1458_s15, %s1768_s15  }
   0x3   : > { %s97_s20 = ssub.s32 %s1365_s17, %s1473_s19  ;;  %s100_s21 = sadd.s32 1, %s1361_s16 }
   0x4   : > { %p98_p0 = scmp.eq.s32.totalorder %s97_s20, 0  ;;  %p110_p1 = scmp.ne.s32.totalorder %s1361_s16, %s1357_s15 }
   0x5   : > { %p111_p2 = scmp.eq.s32.totalorder %s1471_s18, 1  ;;  %p1075_p3 = scmp.ge.s32.totalorder %s1365_s17, 1 }
   0x6   : > { %s1481_s22 = scalar_select %p98_p0, %s1361_s16, %s100_s21  }
   0x7   : > { %p1483_p4 = por %p111_p2, %p110_p1  ;;  %p203_p5 = scmp.lt.s32.totalorder %s1365_s17, 3 }
   0x9   : > { %p204_p6 = pnand %p1075_p3, %p203_p5 }
   0xa   : > { %s1488_s24 = sshll.u32 (!%p204_p6), %s1471_s18, 3  ;;  %s1431_s30 = smov (!%p204_p6), 64   ;;  %v1432_v16 = vmov (!%p204_p6), 1966171168   ;;  %v300_v18 = vlaneseq (!%p204_p6) }
   0xb   : > { %207 = sbr.rel (%p204_p6) target bundleno = 286 (0x11e), region = 32  ;;  %p260_p7 = scmp.lt.s32.totalorder (!%p204_p6), %s1488_s24, 11  ;;  %v298_v17 = vunpack.c.l.s4 (!%p204_p6), %v1432_v16 }
   0xc   : > { %p250_p8 = scmp.lt.s32.totalorder (!%p204_p6), %s1471_s18, 1  ;;  %v301_v20 = vshrl.u32 (!%p204_p6), %v300_v18, 7  ;;  %s241_s14 = sand.u32 (!%p204_p6), 1, %s1357_s15  }
   0xd   : > { %v299_v19 = vunpack.c.0.s8 (!%p204_p6), %v298_v17  ;;  %s1076_s17 = sshll.u32 (!%p204_p6), %s241_s14, 5  ;;  %s1077_s21 = sshll.u32 (!%p204_p6), %s241_s14, 4 }
   0xe   : > { %v421_v33 = vsub.s32 (!%p204_p6), 0, %v301_v20  ;;  %s1597_s20 = scalar_lea.vmem (!%p204_p6), [#allocation2], %s1076_s17  }
   0xf   : > { %v302_v21 = vsub.s32 (!%p204_p6), %v299_v19, %v301_v20 }
  0x12   : > { %s261_s25 = scalar_select %p260_p7, %s1488_s24, 11 }
  0x13   : > { %s251_s9 = scalar_select %p250_p8, %s1471_s18, 1 }
  0x14   : > { %s1081_s26 = sshll.u32 %s261_s25, 2  ;;  %s1083_s5 = sshll.u32 %s261_s25, 1 }
  0x15   : > { %s263_s29 = scalar_lea.vmem %s1757_s1, %s1081_s26  ;;  %s277_s8 = scalar_lea.vmem %s1758_s2, %s1083_s5 }
  0x16   : > { %v1495_v0 = vld [vmem:[%s263_s29 + $0x8] sm:$0xf]  ;;  %v1497_v1 = vld [vmem:[%s263_s29] sm:$0xf]  ;;  %v1503_v2 = vld [vmem:[%s263_s29 + $0xc] sm:$0xf] }
  0x17   : > { %407 = vrot.lane.b32.xlu1 %v1495_v0, %s1431_s30  ;;  %403 = vrot.lane.b32.xlu0 %v1497_v1, %s1431_s30  ;;  %v1505_v3 = vld [vmem:[%s263_s29 + $0x4] sm:$0xf]  ;;  %v1511_v4 = vld [vmem:[%s263_s29 + $0x14] sm:$0xf]  ;;  %s1116_s10 = sshll.u32 %s251_s9, 4  ;;  %s1625_s25 = scalar_lea.vmem [#allocation3], %s1077_s21  }
  0x18   : > { %v1513_v5 = vld [vmem:[%s263_s29 + $0x10] sm:$0xf]  ;;  %v1519_v6 = vld [vmem:[%s263_s29 + $0x1c] sm:$0xf]  ;;  %v1521_v7 = vld [vmem:[%s263_s29 + $0x18] sm:$0xf]  ;;  %s254_s13 = scalar_lea.vmem %s1756_s0, %s1116_s10 }
  0x19   : > { %v1530_v8 = vld [vmem:[%s277_s8 + $0x2] sm:$0x3]  ;;  %v1532_v9 = vld [vmem:[%s277_s8] sm:$0x3]  ;;  %v1538_v10 = vld [vmem:[%s277_s8 + $0x6] sm:$0x3] }
  0x1a   : > { %v1540_v11 = vld [vmem:[%s277_s8 + $0x4] sm:$0x3]  ;;  %v1546_v12 = vld [vmem:[%s277_s8 + $0xa] sm:$0x3]  ;;  %v1548_v13 = vld [vmem:[%s277_s8 + $0x8] sm:$0x3] }
  0x1b   : > { %409 = vrot.lane.b32.xlu1 %v1503_v2, %s1431_s30  ;;  %405 = vrot.lane.b32.xlu0 %v1505_v3, %s1431_s30  ;;  %v1554_v14 = vld [vmem:[%s277_s8 + $0xe] sm:$0x3]  ;;  %v1556_v15 = vld [vmem:[%s277_s8 + $0xc] sm:$0x3]  ;;  %s599_s15 = ssub.s32 (%p1483_p4), 12, %s1488_s24  ;;  %s1117_s26 = sshll.u32 (%p1483_p4), %s1471_s18, 5 }
  0x1c   : > { %v293_v22 = vld [vmem:[%s254_s13] sm:$0xff]  ;;  %v294_v23 = vld [vmem:[%s254_s13 + $0x8] sm:$0xff]  ;;  %p600_p9 = scmp.lt.s32.totalorder (%p1483_p4), %s599_s15, 8  ;;  %s1651_s29 = scalar_lea.vmem (%p1483_p4), %s1759_s3, %s1117_s26  }
  0x1d   : > { %v303_v24 = vrot.slane %v293_v22, %v302_v21  ;;  %v353_v25 = vrot.slane %v294_v23, %v302_v21  ;;  %v296_v26 = vcombine.high %v293_v22, %v293_v22  ;;  %v346_v31 = vcombine.high %v294_v23, %v294_v23 }
  0x1f   : > { %413 = vrot.lane.b32.xlu1 %v1511_v4, %s1431_s30  ;;  %411 = vrot.lane.b32.xlu0 %v1513_v5, %s1431_s30  ;;  %v319_v27 = vrot.slane %v303_v24, %v302_v21  ;;  %v311_v28 = vcombine.high %v303_v24, %v303_v24  ;;  %v369_v29 = vrot.slane %v353_v25, %v302_v21 }
  0x20   : > { %v361_v30 = vcombine.high %v353_v25, %v353_v25  ;;  %v310_v32 = vrot.slane %v296_v26, %v302_v21  ;;  %v360_v38 = vrot.slane %v346_v31, %v302_v21 }
  0x21   : > { %v341_v34 = vcombine.high %v319_v27, %v319_v27  ;;  %v333_v35 = vrot.slane %v311_v28, %v302_v21  ;;  %v391_v36 = vcombine.high %v369_v29, %v369_v29  ;;  %v1569_v41 = vrot.slane %v319_v27, %v421_v33 }
  0x22   : > { %v383_v37 = vrot.slane %v361_v30, %v302_v21  ;;  %v312_v39 = vcombine.high %v310_v32, %v310_v32  ;;  %v1574_v44 = vrot.slane %v369_v29, %v421_v33  ;;  %v362_v46 = vcombine.high %v360_v38, %v360_v38 }
  0x23   : > { %417 = vrot.lane.b32.xlu1 %v1519_v6, %s1431_s30  ;;  %415 = vrot.lane.b32.xlu0 %v1521_v7, %s1431_s30  ;;  %v1567_v40 = vrot.slane %v341_v34, %v421_v33  ;;  %v343_v42 = vcombine.high %v333_v35, %v333_v35  ;;  %v1572_v43 = vrot.slane %v391_v36, %v421_v33 }
  0x24   : > { %v393_v45 = vcombine.high %v383_v37, %v383_v37  ;;  %v426_v47 = vrot.slane %v333_v35, %v421_v33  ;;  %v340_v48 = vrot.slane %v312_v39, %v302_v21  ;;  %v326_v49 = vrot.slane %v310_v32, %v302_v21 }
  0x25   : > { %v461_v50 = vmul.f32 %v1567_v40, %v1495_v0  ;;  %v459_v51 = vmul.f32 %v1569_v41, %v1497_v1  ;;  %v1580_v52 = vrot.slane %v343_v42, %v421_v33  ;;  %v474_v55 = vrot.slane %v383_v37, %v421_v33 }
  0x26   : > { %v376_v56 = vrot.slane %v360_v38, %v302_v21  ;;  %v1586_v59 = vrot.slane %v393_v45, %v421_v33  ;;  %v390_v60 = vrot.slane %v362_v46, %v302_v21  ;;  %v460_v61 = vmul.f32 %v426_v47, %v1505_v3 }
  0x27   : > { %541 = vrot.lane.b32.xlu1 %v1530_v8, %s1431_s30  ;;  %539 = vrot.lane.b32.xlu0 %v1532_v9, %s1431_s30  ;;  %v1589_v62 = vrot.slane %v340_v48, %v421_v33  ;;  %v1591_v63 = vrot.slane %v326_v49, %v421_v33  ;;  %v342_v0 = vcombine.high %v326_v49, %v326_v49 }
  0x28   : > { %v462_v1 = vmul.f32 %v1580_v52, %v1503_v2  ;;  %v344_v16 = vcombine.high %v340_v48, %v340_v48  ;;  %v1595_v22 = vrot.slane %v376_v56, %v421_v33  ;;  %v392_v23 = vcombine.high %v376_v56, %v376_v56 }
  0x29   : > { %v490_v2 = vrot.slane %v390_v60, %v421_v33  ;;  %v394_v24 = vcombine.high %v390_v60, %v390_v60  ;;  %v463_v25 = vmul.f32 %v1591_v63, %v1513_v5  ;;  %v446_v26 = vrot.slane %v342_v0, %v421_v33 }
  0x2a   : > { %v464_v27 = vmul.f32 %v1589_v62, %v1511_v4  ;;  %v450_v28 = vrot.slane %v344_v16, %v421_v33  ;;  %v494_v37 = vrot.slane %v392_v23, %v421_v33  ;;  %v556_v49 = vmul.f32 %v1530_v8, %v426_v47 }
  0x2b   : > { %545 = vrot.lane.b32.xlu1 %v1538_v10, %s1431_s30  ;;  %543 = vrot.lane.b32.xlu0 %v1540_v11, %s1431_s30  ;;  %v498_v36 = vrot.slane %v394_v24, %v421_v33  ;;  %v465_v38 = vmul.f32 %v446_v26, %v1521_v7  ;;  %v558_v56 = vmul.f32 %v1538_v10, %v1580_v52 }
  0x2c   : > { %v466_v5 = vmul.f32 %v450_v28, %v1519_v6  ;;  %v557_v8 = vmul.f32 %v1540_v11, %v1567_v40  ;;  %v560_v10 = vmul.f32 %v1546_v12, %v1589_v62  ;;  %v559_v11 = vmul.f32 %v1548_v13, %v1591_v63 }
  0x2f   : > { %549 = vrot.lane.b32.xlu1 %v1546_v12, %s1431_s30  ;;  %547 = vrot.lane.b32.xlu0 %v1548_v13, %s1431_s30  ;;  %v561_v12 = vmul.f32 %v1556_v15, %v446_v26 }
  0x33   : > { %553 = vrot.lane.b32.xlu1 %v1554_v14, %s1431_s30  ;;  %551 = vrot.lane.b32.xlu0 %v1556_v15, %s1431_s30 }
  0x89   : > { %v408_v53 = vpop.permute.xlu1 %407  ;;  %v404_v54 = vpop.permute.xlu0 %403 }
  0x8a   : > { %v509_v57 = vmul.f32 %v1572_v43, %v408_v53  ;;  %v507_v58 = vmul.f32 %v1574_v44, %v404_v54 }
  0x8c   : > { %v517_v17 = vadd.f32 %v509_v57, %v461_v50  ;;  %v515_v18 = vadd.f32 %v507_v58, %v459_v51  ;;  %v555_v50 = vmul.f32 %v1532_v9, %v1569_v41 }
  0x8d   : > { %v410_v19 = vpop.permute.xlu1 %409  ;;  %v406_v20 = vpop.permute.xlu0 %405 }
  0x8e   : > { %525 = vst [vmem:[%s1597_s20 + $0x8] sm:$0xf] %v517_v17  ;;  %523 = vst [vmem:[%s1597_s20] sm:$0xf] %v515_v18  ;;  %v510_v3 = vmul.f32 %v1586_v59, %v410_v19  ;;  %v508_v21 = vmul.f32 %v474_v55, %v406_v20 }
  0x90   : > { %v518_v29 = vadd.f32 %v510_v3, %v462_v1  ;;  %v516_v30 = vadd.f32 %v508_v21, %v460_v61 }
  0x91   : > { %v414_v31 = vpop.permute.xlu1 %413  ;;  %v412_v32 = vpop.permute.xlu0 %411 }
  0x92   : > { %526 = vst [vmem:[%s1597_s20 + $0xc] sm:$0xf] %v518_v29  ;;  %524 = vst [vmem:[%s1597_s20 + $0x4] sm:$0xf] %v516_v30  ;;  %v512_v34 = vmul.f32 %v490_v2, %v414_v31  ;;  %v511_v35 = vmul.f32 %v1595_v22, %v412_v32 }
  0x94   : > { %v520_v4 = vadd.f32 %v512_v34, %v464_v27  ;;  %v519_v39 = vadd.f32 %v511_v35, %v463_v25 }
  0x95   : > { %v418_v42 = vpop.permute.xlu1 %417  ;;  %v416_v45 = vpop.permute.xlu0 %415 }
  0x96   : > { %528 = vst [vmem:[%s1597_s20 + $0x14] sm:$0xf] %v520_v4  ;;  %527 = vst [vmem:[%s1597_s20 + $0x10] sm:$0xf] %v519_v39  ;;  %v514_v46 = vmul.f32 %v498_v36, %v418_v42  ;;  %v513_v48 = vmul.f32 %v494_v37, %v416_v45 }
  0x98   : > { %v522_v33 = vadd.f32 %v514_v46, %v466_v5  ;;  %v521_v51 = vadd.f32 %v513_v48, %v465_v38 }
  0x99   : > { %v542_v6 = vpop.permute.xlu1 %541  ;;  %v540_v7 = vpop.permute.xlu0 %539 }
  0x9a   : > { %530 = vst [vmem:[%s1597_s20 + $0x1c] sm:$0xf] %v522_v33  ;;  %529 = vst [vmem:[%s1597_s20 + $0x18] sm:$0xf] %v521_v51  ;;  %v564_v53 = vmul.f32 %v542_v6, %v474_v55  ;;  %v563_v54 = vmul.f32 %v540_v7, %v1574_v44 }
  0x9c   : > { %v572_v47 = vadd.f32 %v564_v53, %v556_v49  ;;  %v571_v57 = vadd.f32 %v563_v54, %v555_v50 }
  0x9d   : > { %v546_v9 = vpop.permute.xlu1 %545  ;;  %v544_v41 = vpop.permute.xlu0 %543 }
  0x9e   : > { %580 = vst [vmem:[%s1625_s25 + $0x2] sm:$0x3] %v572_v47  ;;  %579 = vst [vmem:[%s1625_s25] sm:$0x3] %v571_v57  ;;  %v566_v44 = vmul.f32 %v546_v9, %v1586_v59  ;;  %v565_v55 = vmul.f32 %v544_v41, %v1572_v43  ;;  %v562_v43 = vmul.f32 %v1554_v14, %v450_v28 }
  0xa0   : > { %v574_v40 = vadd.f32 %v566_v44, %v558_v56  ;;  %v573_v52 = vadd.f32 %v565_v55, %v557_v8 }
  0xa1   : > { %v550_v58 = vpop.permute.xlu1 %549  ;;  %v548_v60 = vpop.permute.xlu0 %547 }
  0xa2   : > { %582 = vst [vmem:[%s1625_s25 + $0x6] sm:$0x3] %v574_v40  ;;  %581 = vst [vmem:[%s1625_s25 + $0x4] sm:$0x3] %v573_v52  ;;  %v568_v61 = vmul.f32 %v550_v58, %v490_v2  ;;  %v567_v59 = vmul.f32 %v548_v60, %v1595_v22 }
  0xa4   : > { %v576_v62 = vadd.f32 %v568_v61, %v560_v10  ;;  %v575_v0 = vadd.f32 %v567_v59, %v559_v11  ;;  %597 = sbr.rel (!%p1483_p4) target bundleno = 225 (0xe1), region = 36 }
  0xa5   : > { %v554_v1 = vpop.permute.xlu1 %553  ;;  %v552_v13 = vpop.permute.xlu0 %551 }
  0xa6   : > { %584 = vst [vmem:[%s1625_s25 + $0xa] sm:$0x3] %v576_v62  ;;  %583 = vst [vmem:[%s1625_s25 + $0x8] sm:$0x3] %v575_v0  ;;  %v570_v63 = vmul.f32 %v554_v1, %v498_v36  ;;  %v569_v16 = vmul.f32 %v552_v13, %v494_v37 }
  0xa8   : > { %v578_v17 = vadd.f32 %v570_v63, %v562_v43  ;;  %v577_v18 = vadd.f32 %v569_v16, %v561_v12 }
  0xaa   : > { %586 = vst [vmem:[%s1625_s25 + $0xe] sm:$0x3] %v578_v17  ;;  %585 = vst [vmem:[%s1625_s25 + $0xc] sm:$0x3] %v577_v18 }
  0xab   : > { %s1772_s15 = smov (!%p600_p9, %s599_s15), 8 }
  0xac   : > { %s1087_s30 = sshll.u32 %s1772_s15, 6 }
  0xad   : > { %p1090_p10 = scmp.eq.s32.totalorder %s1087_s30, 0 }
  0xae   : > { %s1657_s5 = sshrl.u32 (!%p1090_p10), %s1772_s15, 3 }
  0xaf   : > { %608 = sbr.rel (%p1090_p10) target bundleno = 225 (0xe1), region = 40  ;;  %p1091_p11 = scmp.le.s32.totalorder (!%p1090_p10), %s1657_s5, 0 }
  0xb6   : > { %979 = sbr.rel (%p1091_p11) target bundleno = 204 (0xcc), region = 186  ;;  %s1762_s6 = smov (!%p1091_p11), %s1651_s29 }
  0xb7   : > { %s1763_s7 = smov (!%p1091_p11), %s1597_s20  ;;  %s1666_s8 = smov (!%p1091_p11), 0  }
  0xb8   : > { %s1668_s9 = smov (!%p1091_p11), 0  }
  0xbd LB: >> { %v624_v14 = vld [vmem:[%s1373_s7] sm:$0xf]  ;;  %v626_v15 = vld [vmem:[%s1373_s7 + $0x4] sm:$0xf]  ;;  %v628_v19 = vld [vmem:[%s1373_s7 + $0x8] sm:$0xf]  ;;  %s1381_s9 = sphi %s1668_s9, %s618_s9   ;;  %s1377_s8 = sphi %s1666_s8, %s1764_s8   ;;  %s1373_s7 = sphi %s1763_s7, %s645_s7   ;;  %s1369_s6 = sphi %s1762_s6, %s646_s6  }
  0xbe   : >> { %625 = vst [vmem:[%s1369_s6] sm:$0xf] %v624_v14  ;;  %627 = vst [vmem:[%s1369_s6 + $0x4] sm:$0xf] %v626_v15  ;;  %v630_v20 = vld [vmem:[%s1373_s7 + $0xc] sm:$0xf]  ;;  %s640_s10 = sadd.s32 1, %s1377_s8 }
  0xbf   : >> { %629 = vst [vmem:[%s1369_s6 + $0x8] sm:$0xf] %v628_v19  ;;  %v632_v22 = vld [vmem:[%s1373_s7 + $0x10] sm:$0xf]  ;;  %v634_v23 = vld [vmem:[%s1373_s7 + $0x14] sm:$0xf]  ;;  %p641_p12 = scmp.ge.s32.totalorder %s640_s10, %s1657_s5 }
  0xc0   : >> { %631 = vst [vmem:[%s1369_s6 + $0xc] sm:$0xf] %v630_v20  ;;  %633 = vst [vmem:[%s1369_s6 + $0x10] sm:$0xf] %v632_v22  ;;  %v636_v3 = vld [vmem:[%s1373_s7 + $0x18] sm:$0xf] }
  0xc1   : >> { %635 = vst [vmem:[%s1369_s6 + $0x14] sm:$0xf] %v634_v23  ;;  %v638_v21 = vld [vmem:[%s1373_s7 + $0x1c] sm:$0xf]  ;;  %637 = vst [vmem:[%s1369_s6 + $0x18] sm:$0xf] %v636_v3 }
  0xc2   : >> { %639 = vst [vmem:[%s1369_s6 + $0x1c] sm:$0xf] %v638_v21  ;;  %s1774_s10 = smov (%p641_p12, %s640_s10), 0  ;;  %s618_s9 = sadd.s32 1, %s1381_s9  }
  0xc3   : >> { %s1092_s11 = sshll.u32 %s1774_s10, 5  ;;  %p617_p13 = scmp.ge.s32.totalorder %s618_s9, %s1657_s5 }
  0xc4   : >> { %s645_s7 = scalar_lea.vmem %s1597_s20, %s1092_s11 [#allocation2]   ;;  %s646_s6 = scalar_lea.vmem %s1651_s29, %s1092_s11  }
  0xc5   : >> { %s1764_s8 = smov %s1774_s10  ;;  %620 = sbr.rel (!%p617_p13) target bundleno = 189 (0xbd), region = 192 }
  0xcc PF: > { %s1687_s12 = sand.u32 7, %s1772_s15   ;;  %s1118_s13 = sshll.u32 %s1657_s5, 5 }
  0xcd   : > { %s651_s14 = scalar_lea.vmem %s1597_s20, %s1118_s13 [#allocation2]   ;;  %s653_s17 = scalar_lea.vmem %s1651_s29, %s1118_s13  }
  0xce   : > { %p1097_p0 = scmp.le.s32.totalorder %s1687_s12, 0 }
  0xcf   : > { %s1383_s21 = smov (!%p1097_p0), %s653_s17   ;;  %s1387_s26 = smov (!%p1097_p0), %s651_s14  }
  0xd0   : > { %993 = sbr.rel (%p1097_p0) target bundleno = 225 (0xe1), region = 197  ;;  %s1391_s27 = smov (!%p1097_p0), 0  }
  0xd1   : > { %s1395_s28 = smov (!%p1097_p0), 0  }
  0xd7 LB: >> { %v663_v2 = vld [vmem:[%s1389_s26] sm:$0xf]  ;;  %s665_s15 = sadd.s32 1, %s1393_s27  ;;  %s657_s28 = sadd.s32 1, %s1397_s28   ;;  %s1397_s28 = sphi %s1395_s28, %s657_s28   ;;  %s1393_s27 = sphi %s1391_s27, %s1392_s27   ;;  %s1389_s26 = sphi %s1387_s26, %s670_s26   ;;  %s1385_s21 = sphi %s1383_s21, %s671_s21  }
  0xd8   : >> { %664 = vst [vmem:[%s1385_s21] sm:$0xf] %v663_v2  ;;  %p666_p1 = scmp.ge.s32.totalorder %s665_s15, %s1687_s12  ;;  %p656_p2 = scmp.ge.s32.totalorder %s657_s28, %s1687_s12 }
  0xda   : >> { %s1776_s15 = smov (%p666_p1, %s665_s15), 0  ;;  %659 = sbr.rel (!%p656_p2) target bundleno = 215 (0xd7), region = 203 }
  0xdb   : >> { %s1098_s20 = sshll.u32 %s1776_s15, 2  ;;  %s1392_s27 = smov %s1776_s15  }
  0xdc   : >> { %s670_s26 = scalar_lea.vmem %s651_s14, %s1098_s20 [#allocation2]   ;;  %s671_s21 = scalar_lea.vmem %s653_s17, %s1098_s20  }
  0xe1 PF: > { %736 = sbr.rel (!%p1483_p4) target bundleno = 286 (0x11e), region = 84  ;;  %s738_s29 = ssub.s32 (%p1483_p4), 12, %s1488_s24 }
  0xe2   : > { %s1120_s30 = sshll.u32 (%p1483_p4), %s1471_s18, 4  ;;  %p739_p3 = scmp.lt.s32.totalorder (%p1483_p4), %s738_s29, 8 }
  0xe3   : > { %s1702_s7 = scalar_lea.vmem (%p1483_p4), %s1760_s4, %s1120_s30  }
  0xe8   : > { %s1778_s29 = smov (!%p739_p3, %s738_s29), 8 }
  0xe9   : > { %s1101_s8 = sshll.u32 %s1778_s29, 5 }
  0xea   : > { %p1104_p5 = scmp.eq.s32.totalorder %s1101_s8, 0 }
  0xeb   : > { %s1708_s9 = sshrl.u32 (!%p1104_p5), %s1778_s29, 3 }
  0xec   : > { %747 = sbr.rel (%p1104_p5) target bundleno = 286 (0x11e), region = 88  ;;  %p1105_p4 = scmp.le.s32.totalorder (!%p1104_p5), %s1708_s9, 0 }
  0xf3   : > { %1007 = sbr.rel (%p1105_p4) target bundleno = 265 (0x109), region = 208  ;;  %s1765_s18 = smov (!%p1105_p4), %s1702_s7 }
  0xf4   : > { %s1766_s23 = smov (!%p1105_p4), %s1625_s25  ;;  %s1717_s24 = smov (!%p1105_p4), 0  }
  0xf5   : > { %s1719_s10 = smov (!%p1105_p4), 0  }
  0xfa LB: >> { %v763_v24 = vld [vmem:[%s1405_s23] sm:$0x3]  ;;  %v765_v25 = vld [vmem:[%s1405_s23 + $0x2] sm:$0x3]  ;;  %v767_v26 = vld [vmem:[%s1405_s23 + $0x4] sm:$0x3]  ;;  %s1413_s10 = sphi %s1719_s10, %s757_s10   ;;  %s1409_s24 = sphi %s1717_s24, %s1767_s24   ;;  %s1405_s23 = sphi %s1766_s23, %s784_s23   ;;  %s1401_s18 = sphi %s1765_s18, %s785_s18  }
  0xfb   : >> { %764 = vst [vmem:[%s1401_s18] sm:$0x3] %v763_v24  ;;  %766 = vst [vmem:[%s1401_s18 + $0x2] sm:$0x3] %v765_v25  ;;  %v769_v27 = vld [vmem:[%s1405_s23 + $0x6] sm:$0x3]  ;;  %s779_s11 = sadd.s32 1, %s1409_s24 }
  0xfc   : >> { %768 = vst [vmem:[%s1401_s18 + $0x4] sm:$0x3] %v767_v26  ;;  %v771_v28 = vld [vmem:[%s1405_s23 + $0x8] sm:$0x3]  ;;  %v773_v29 = vld [vmem:[%s1405_s23 + $0xa] sm:$0x3]  ;;  %p780_p6 = scmp.ge.s32.totalorder %s779_s11, %s1708_s9 }
  0xfd   : >> { %770 = vst [vmem:[%s1401_s18 + $0x6] sm:$0x3] %v769_v27  ;;  %772 = vst [vmem:[%s1401_s18 + $0x8] sm:$0x3] %v771_v28  ;;  %v775_v30 = vld [vmem:[%s1405_s23 + $0xc] sm:$0x3] }
  0xfe   : >> { %774 = vst [vmem:[%s1401_s18 + $0xa] sm:$0x3] %v773_v29  ;;  %v777_v31 = vld [vmem:[%s1405_s23 + $0xe] sm:$0x3]  ;;  %776 = vst [vmem:[%s1401_s18 + $0xc] sm:$0x3] %v775_v30 }
  0xff   : >> { %778 = vst [vmem:[%s1401_s18 + $0xe] sm:$0x3] %v777_v31  ;;  %s1780_s11 = smov (%p780_p6, %s779_s11), 0  ;;  %s757_s10 = sadd.s32 1, %s1413_s10  }
 0x100   : >> { %s1106_s12 = sshll.u32 %s1780_s11, 4  ;;  %p756_p7 = scmp.ge.s32.totalorder %s757_s10, %s1708_s9 }
 0x101   : >> { %s784_s23 = scalar_lea.vmem %s1625_s25, %s1106_s12 [#allocation3]   ;;  %s785_s18 = scalar_lea.vmem %s1702_s7, %s1106_s12  }
 0x102   : >> { %s1767_s24 = smov %s1780_s11  ;;  %759 = sbr.rel (!%p756_p7) target bundleno = 250 (0xfa), region = 214 }
 0x109 PF: > { %s1738_s13 = sand.u32 7, %s1778_s29   ;;  %s1121_s14 = sshll.u32 %s1708_s9, 4 }
 0x10a   : > { %s790_s17 = scalar_lea.vmem %s1625_s25, %s1121_s14 [#allocation3]   ;;  %s792_s21 = scalar_lea.vmem %s1702_s7, %s1121_s14  }
 0x10b   : > { %p1111_p8 = scmp.le.s32.totalorder %s1738_s13, 0 }
 0x10c   : > { %s1415_s26 = smov (!%p1111_p8), %s792_s21   ;;  %s1419_s27 = smov (!%p1111_p8), %s790_s17  }
 0x10d   : > { %1021 = sbr.rel (%p1111_p8) target bundleno = 286 (0x11e), region = 219  ;;  %s1423_s28 = smov (!%p1111_p8), 0  }
 0x10e   : > { %s1427_s15 = smov (!%p1111_p8), 0  }
 0x114 LB: >> { %v802_v32 = vld [vmem:[%s1421_s27] sm:$0x3]  ;;  %s804_s20 = sadd.s32 1, %s1425_s28  ;;  %s796_s15 = sadd.s32 1, %s1429_s15   ;;  %s1429_s15 = sphi %s1427_s15, %s796_s15   ;;  %s1425_s28 = sphi %s1423_s28, %s1424_s28   ;;  %s1421_s27 = sphi %s1419_s27, %s809_s27   ;;  %s1417_s26 = sphi %s1415_s26, %s810_s26  }
 0x115   : >> { %803 = vst [vmem:[%s1417_s26] sm:$0x3] %v802_v32  ;;  %p805_p9 = scmp.ge.s32.totalorder %s804_s20, %s1738_s13  ;;  %p795_p10 = scmp.ge.s32.totalorder %s796_s15, %s1738_s13 }
 0x117   : >> { %s1782_s20 = smov (%p805_p9, %s804_s20), 0  ;;  %798 = sbr.rel (!%p795_p10) target bundleno = 276 (0x114), region = 225 }
 0x118   : >> { %s1112_s25 = sshll.u32 %s1782_s20, 1  ;;  %s1424_s28 = smov %s1782_s20  }
 0x119   : >> { %s809_s27 = scalar_lea.vmem %s790_s17, %s1112_s25 [#allocation3]   ;;  %s810_s26 = scalar_lea.vmem %s792_s21, %s1112_s25  }
 0x11e PF: > { %p12_p11 = scmp.ge.s32.totalorder %s1473_s19, 4   ;;  %s1768_s15 = smov %s1361_s16 }
 0x11f   : > { %s1769_s16 = smov %s1481_s22  ;;  %s1770_s17 = smov %s1473_s19 }
 0x120   :  { %14 = sbr.rel (!%p12_p11) target bundleno = 2 (0x2), region = 236 }

</bundles_post_ra>
